<compile_context>
chip_gen: v6e
topology: v6e:2x2x1
jax: 0.10.0
libtpu: 0.0.40
codegen_flags: <defaults>
</compile_context>

<pallas_src>
import math

import jax
import jax.numpy as jnp
from jax.experimental import pallas as pl
from jax.experimental.pallas import tpu as pltpu


def _ew_linear_kernel_ab(p_ref, x_ref, o_ref):
    # p_ref: (2, TF) f32 (row 0 = a, row 1 = b); x_ref / o_ref: (TB, TF).
    a = p_ref[0:1, :]
    b = p_ref[1:2, :]
    x = x_ref[...].astype(jnp.float32)
    o_ref[...] = (x * a + b).astype(o_ref.dtype)


def _ew_linear_kernel_a(p_ref, x_ref, o_ref):
    a = p_ref[0:1, :]
    x = x_ref[...].astype(jnp.float32)
    o_ref[...] = (x * a).astype(o_ref.dtype)


def _tpu_vmem_capacity_bytes():
    """Best-effort physical VMEM query; conservative (v7x-sized) fallback."""
    try:
        info = pltpu.get_tpu_info()
        for attr in ("vmem_capacity_bytes", "vmem_bytes", "vmem_size_bytes"):
            v = getattr(info, attr, None)
            if v:
                return int(v)
    except Exception:
        pass
    return 64 << 20


def _choose_tiles(B, F, isz_x, isz_o, *, max_tile_bytes, max_rows=1024,
                  min_parallel_steps=1):
    """Pick (tile_b, tile_f): ~max_tile_bytes per x tile, layout-friendly dims."""
    isz = max(isz_x, isz_o)
    # Round batch tiles to the native sublane packing of the narrowest dtype
    # (f32 -> 8, bf16 -> 16, int8/fp8 -> 32) so packed layouts stay native.
    sub = max(8, 32 // max(1, min(isz_x, isz_o)))

    tile_f = F
    if F % 128 == 0:
        # Split the feature dim only if even a minimal-height block would
        # already blow the per-tile budget (very wide F).
        while (tile_f % 256 == 0 and tile_f > 128
               and tile_f * sub * isz > max_tile_bytes):
            tile_f //= 2
    n_f = -(-F // tile_f)

    rows_budget = max(1, max_tile_bytes // max(1, tile_f * isz))
    tile_b = min(max_rows, rows_budget)
    tile_b = max(sub, (tile_b // sub) * sub)
    b_ceil = -(-B // sub) * sub
    tile_b = min(tile_b, b_ceil)

    # Ensure enough grid steps to keep every TensorCore busy (v7x has 2 TCs).
    if min_parallel_steps > 1 and B > sub:
        n_b = -(-B // tile_b)
        if n_f * n_b < min_parallel_steps:
            want_b = max(1, -(-min_parallel_steps // n_f))
            tb = -(-B // want_b)
            tb = max(sub, -(-tb // sub) * sub)
            tile_b = min(tile_b, tb)
    return tile_b, tile_f


def elementwise_linear(x, a, b=None, *, out_dtype=None):
    """Pallas TPU implementation of ElementWiseLinear.forward: a * x (+ b).

    x: (..., F); a, b: scalars or vectors broadcastable to (F,).
    out_dtype: optional override of the torch-style promoted result dtype
    (use x.dtype to avoid f32 writeback for low-precision activations).
    """
    # TODO(synk): a/b shaped like the full activation (same shape as x) are not
    # handled by this wrapper; only scalar / per-feature (F,) parameters are.
    orig_shape = x.shape
    F = orig_shape[-1] if orig_shape else 1
    B = int(math.prod(orig_shape[:-1])) if len(orig_shape) > 1 else 1

    a = jnp.asarray(a)
    b_arr = None if b is None else jnp.asarray(b)
    if out_dtype is None:
        dts = [x.dtype, a.dtype] + ([] if b_arr is None else [b_arr.dtype])
        out_dtype = jnp.result_type(*dts)
    out_dtype = jnp.dtype(out_dtype)

    # Params live in a single resident f32 buffer; compute is done in f32 and
    # only the final store is cast to out_dtype.
    a_row = jnp.broadcast_to(a.astype(jnp.float32).reshape(-1), (F,))[None, :]
    if b_arr is not None:
        b_row = jnp.broadcast_to(b_arr.astype(jnp.float32).reshape(-1),
                                 (F,))[None, :]
        params = jnp.concatenate([a_row, b_row], axis=0)  # (2, F)
        kernel = _ew_linear_kernel_ab
    else:
        params = a_row                                    # (1, F)
        kernel = _ew_linear_kernel_a

    x2 = x.reshape(B, F)

    # Lane-densify: if F is not a 128-multiple, fold k batch rows into the lane
    # axis (free, contiguous reshape) so stores are full-width instead of masked.
    k = 1
    if F % 128 != 0:
        kk = 128 // math.gcd(F, 128)
        if kk > 1 and B % kk == 0:
            k = kk
    if k > 1:
        B_eff, F_eff = B // k, F * k
        x2 = x2.reshape(B_eff, F_eff)
        params = jnp.tile(params, (1, k))
    else:
        B_eff, F_eff = B, F

    # Generation-aware tile / VMEM budgets.
    vmem_cap = _tpu_vmem_capacity_bytes()
    big_vmem = vmem_cap >= (100 << 20)                 # v5e / v6e (128 MiB)
    max_tile_bytes = (8 << 20) if big_vmem else (4 << 20)
    vmem_ceiling = (96 << 20) if big_vmem else (48 << 20)
    min_steps = 1 if big_vmem else 8                   # feed both v7x TCs

    isz_x = jnp.dtype(x.dtype).itemsize
    isz_o = out_dtype.itemsize
    tile_b, tile_f = _choose_tiles(B_eff, F_eff, isz_x, isz_o,
                                   max_tile_bytes=max_tile_bytes,
                                   min_parallel_steps=min_steps)

    n_f = pl.cdiv(F_eff, tile_f)
    n_b = pl.cdiv(B_eff, tile_b)
    # Feature tiles on the outer axis so the params block stays resident across
    # the inner batch loop (only matters when tile_f < F_eff).
    grid = (n_f, n_b)

    p_rows = params.shape[0]
    p_spec = pl.BlockSpec((p_rows, tile_f), lambda fi, bi: (0, fi))
    x_spec = pl.BlockSpec((tile_b, tile_f), lambda fi, bi: (bi, fi))
    out_spec = pl.BlockSpec((tile_b, tile_f), lambda fi, bi: (bi, fi))

    # VMEM budget sized from actual need: double-buffered x/out tiles,
    # double-buffered params, f32 compute temporary, slack.
    tile_elems = tile_b * tile_f
    need = (2 * tile_elems * (isz_x + isz_o)
            + 2 * p_rows * tile_f * 4
            + tile_elems * 4
            + (4 << 20))
    vmem_limit = int(min(max(need, 16 << 20), vmem_ceiling))

    out = pl.pallas_call(
        kernel,
        out_shape=jax.ShapeDtypeStruct((B_eff, F_eff), out_dtype),
        grid=grid,
        in_specs=[p_spec, x_spec],
        out_specs=out_spec,
        compiler_params=pltpu.CompilerParams(
            dimension_semantics=("parallel", "parallel"),
            vmem_limit_bytes=vmem_limit,
        ),
    )(params, x2)
    return out.reshape(orig_shape)


if __name__ == "__main__":
    key = jax.random.PRNGKey(0)

    # Small shape consistent with per-feature a/b broadcast over an activation.
    Bt, C, H, W = 2, 4, 16, 16
    x = jax.random.normal(key, (Bt, C, H, W), dtype=jnp.float32)
    a = jnp.linspace(0.5, 1.5, W, dtype=jnp.float32)
    b = jnp.linspace(-1.0, 1.0, W, dtype=jnp.float32)

    # Narrow-F path (F=16 folds into lanes: (128,16) -> (16,128)).
    out = jax.block_until_ready(elementwise_linear(x, a, b))
    ref = a * x + b
    assert out.shape == x.shape and out.dtype == x.dtype
    assert jnp.allclose(out, ref, atol=1e-6, rtol=1e-6)

    # b = None path.
    out_nb = jax.block_until_ready(elementwise_linear(x, a, None))
    assert jnp.allclose(out_nb, a * x, atol=1e-6, rtol=1e-6)

    # Scalar parameters.
    out_sc = jax.block_until_ready(elementwise_linear(x, 2.0, -0.5))
    assert jnp.allclose(out_sc, 2.0 * x - 0.5, atol=1e-6, rtol=1e-6)

    # Lane-dense F (128-multiple) with a ragged batch (not a multiple of 8).
    F2 = 128
    a2 = jnp.linspace(0.5, 1.5, F2, dtype=jnp.float32)
    b2 = jnp.linspace(-1.0, 1.0, F2, dtype=jnp.float32)
    x2 = jax.random.normal(jax.random.PRNGKey(1), (5, F2), dtype=jnp.float32)
    out2 = jax.block_until_ready(elementwise_linear(x2, a2, b2))
    assert jnp.allclose(out2, a2 * x2 + b2, atol=1e-6, rtol=1e-6)

    # Mixed precision: bf16 activations with f32 params (promotes like torch).
    x3 = jax.random.normal(jax.random.PRNGKey(2), (8, F2), dtype=jnp.bfloat16)
    out3 = jax.block_until_ready(elementwise_linear(x3, a2, b2))
    assert out3.dtype == jnp.float32
    assert jnp.allclose(out3, a2 * x3.astype(jnp.float32) + b2,
                        atol=2e-2, rtol=2e-2)

    # out_dtype override keeps the write path in bf16.
    out4 = jax.block_until_ready(
        elementwise_linear(x3, a2, b2, out_dtype=jnp.bfloat16))
    assert out4.dtype == jnp.bfloat16

    print("KERNEL_OK")
</pallas_src>

<mosaic_0001>
module attributes {stable_mosaic.version = 11 : i64} {
  func.func @_ew_linear_kernel_ab(%arg0: i32, %arg1: i32, %arg2: memref<2x128xf32, #tpu.memory_space<vmem>>, %arg3: memref<8x128xf32, #tpu.memory_space<vmem>>, %arg4: memref<8x128xf32, #tpu.memory_space<vmem>>) attributes {dimension_semantics = [#tpu.dimension_semantics<parallel>, #tpu.dimension_semantics<parallel>], iteration_bounds = array<i64: 1, 2>, scalar_prefetch = 0 : i64, scratch_operands = 0 : i64, tpu.core_type = #tpu.core_type<tc>, window_params = [{transform_indices = @transform_0, window_bounds = array<i64: 2, 128>}, {transform_indices = @transform_1, window_bounds = array<i64: 8, 128>}, {transform_indices = @transform_2, window_bounds = array<i64: 8, 128>}]} {
    %c0 = arith.constant 0 : index
    %c0_0 = arith.constant 0 : index
    %0 = vector.load %arg2[%c0, %c0_0] : memref<2x128xf32, #tpu.memory_space<vmem>>, vector<1x128xf32>
    %c1 = arith.constant 1 : index
    %c0_1 = arith.constant 0 : index
    %1 = vector.load %arg2[%c1, %c0_1] : memref<2x128xf32, #tpu.memory_space<vmem>>, vector<1x128xf32>
    %c0_2 = arith.constant 0 : index
    %c0_3 = arith.constant 0 : index
    %2 = vector.load %arg3[%c0_2, %c0_3] : memref<8x128xf32, #tpu.memory_space<vmem>>, vector<8x128xf32>
    %3 = vector.broadcast %0 : vector<1x128xf32> to vector<8x128xf32>
    %4 = arith.mulf %2, %3 : vector<8x128xf32>
    %5 = vector.broadcast %1 : vector<1x128xf32> to vector<8x128xf32>
    %6 = arith.addf %4, %5 : vector<8x128xf32>
    %c0_4 = arith.constant 0 : index
    %c0_5 = arith.constant 0 : index
    %7 = vector.load %arg4[%c0_4, %c0_5] : memref<8x128xf32, #tpu.memory_space<vmem>>, vector<8x128xf32>
    tpu.vector_store %arg4[%c0_4, %c0_5], %6 {strides = array<i32>} : memref<8x128xf32, #tpu.memory_space<vmem>>, vector<8x128xf32>,
    return
  }
  func.func @transform_0(%arg0: i32, %arg1: i32) -> (i32, i32) {
    %c0_i32 = arith.constant 0 : i32
    %c0_i32_0 = arith.constant 0 : i32
    return %c0_i32, %arg0 : i32, i32
  }
  func.func @transform_1(%arg0: i32, %arg1: i32) -> (i32, i32) {
    %c0_i32 = arith.constant 0 : i32
    return %arg1, %arg0 : i32, i32
  }
  func.func @transform_2(%arg0: i32, %arg1: i32) -> (i32, i32) {
    %c0_i32 = arith.constant 0 : i32
    return %arg1, %arg0 : i32, i32
  }
}

</mosaic_0001>

<bundles_post_ra>
// kernel: tpu_custom_call.1
= control target key start
LH: loop header
LB: loop body
LE: loop exit
PB: predicated region body
PF: predicated region fallthrough
CT: control target
= control target key end

     0   :  { %7 = vsyncpa [#allocation3], 0  ;;  %s728_s0 = inlined_call_operand.hbm [shape: f32[2,128], index: 0, kind: input, shape index: {}]   ;;  %s729_s1 = inlined_call_operand.hbm [shape: f32[16,128], index: 1, kind: input, shape index: {}]   ;;  %s730_s2 = inlined_call_operand.hbm [shape: f32[16,128], index: 2, kind: output, shape index: {}]  }
   0x1   :  { %8 = vsyncpa [#allocation6], 0 }
   0x2   :  { %10 = vsyncpa [#allocation6 + $0x1], 0 }
   0x3   :  { %11 = vsyncpa [#allocation4], 0 }
   0x4   :  { %13 = vsyncpa [#allocation4 + $0x1], 0  ;;  %s567_s9 = smov 0   ;;  %s569_s10 = smov 0  }
   0x5   :  { %s571_s11 = smov 0   ;;  %s573_s12 = smov 0  }
   0x6   :  { %s575_s13 = smov 0   ;;  %s577_s14 = smov 0  }
   0x7 LB: > { %s319_s15 = sadd.s32 4294967295, %s547_s14   ;;  %s320_s16 = sadd.s32 4294967294, %s547_s14   ;;  %s547_s14 = sphi %s577_s14, %s19_s14   ;;  %s543_s13 = sphi %s575_s13, %s747_s13   ;;  %s539_s12 = sphi %s573_s12, %s746_s12   ;;  %s535_s11 = sphi %s571_s11, %s745_s11   ;;  %s531_s10 = sphi %s569_s10, %s744_s10   ;;  %s527_s9 = sphi %s567_s9, %s743_s9  }
   0x8   : > { %p79_p0 = scmp.ne.s32.totalorder %s531_s10, %s527_s9  ;;  %p601_p1 = scmp.eq.s32.totalorder %s319_s15, 0 }
   0x9   : > { %p605_p2 = scmp.eq.s32.totalorder %s319_s15, 1  ;;  %p111_p3 = scmp.eq.s32.totalorder %s320_s16, 1 }
   0xa   : > { %p611_p4 = por %p601_p1, %p79_p0  ;;  %p321_p5 = scmp.ge.s32.totalorder %s547_s14, 1 }
   0xb   : > { %p616_p6 = por %p111_p3, %p79_p0  ;;  %p118_p7 = scmp.lt.s32.totalorder %s547_s14, 3 }
   0xc   : > { %s734_s19 = scalar_select %p611_p4, 1, 0 }
   0xd   : > { %s735_s20 = scalar_select %p616_p6, 1, 0 }
   0xe   : > { %p621_p8 = pnand %p321_p5, %p118_p7  ;;  %s549_s22 = smov [#allocation2]  }
   0xf   : > { %s133_s23 = sshll.u32 %s549_s22, 4  ;;  %s28_s25 = sadd.s32 1, %s543_s13  ;;  %s134_s23 = int_to_ptr.vmem [resolvable:$true] %s133_s23 }
  0x10   : > { %p344_p10 = pneg %p621_p8  ;;  %s66_s26 = sadd.s32 1, %s535_s11 }
  0x11   : > { %p29_p12 = scmp.ge.s32.totalorder %s28_s25, 2  ;;  %s420_s27 = scalar_lea.vmem %s134_s23, 32 }
  0x12   : > { %p630_p11 = pnand %p344_p10, %p601_p1  ;;  %p421_p0 = scmp.ne.s32.totalorder %s134_s23, %s420_s27 }
  0x13   : > { %p428_p7 = scmp.lt.s32.totalorder %s134_s23, %s134_s23  ;;  %p429_p6 = scmp.lt.s32.totalorder %s420_s27, %s420_s27 }
  0x14   : > { %p411_p13 = pneg %p630_p11 }
  0x15   : > { %p430_p9 = por %p429_p6, %p428_p7 }
  0x16   : > { %p423_p3 = pnand %p421_p0, %p411_p13 }
  0x18   : > { %p424_p5 = pneg %p423_p3 }
  0x1a   : > { %p431_p4 = pnand %p430_p9, %p424_p5 }
  0x1c   : > { %434 = shalt.err (!%p431_p4)
}
  0x1d   : > { %347 = dma.hbm_to_vmem [thread:$0]  (!%p630_p11), %s728_s0, 32, %s134_s23, [#allocation3]  }
  0x1e   : > { %s749_s25 = smov (%p29_p12, %s28_s25), 0  ;;  %p73_p6 = scmp.ne.s32.totalorder %s535_s11, %s531_s10 }
  0x1f   : > { %p74_p4 = scmp.eq.s32.totalorder %s547_s14, 0  ;;  %s61_s30 = ssub.s32 %s543_s13, %s749_s25 }
  0x20   : > { %p357_p9 = scmp.lt.s32.totalorder %s547_s14, 2  ;;  %p64_p10 = scmp.eq.s32.totalorder %s61_s30, 0 }
  0x21   : > { %p75_p13 = por %p74_p4, %p73_p6  ;;  %p653_p0 = por %p605_p2, %p73_p6 }
  0x22   : > { %s144_s4 = sand.u32 1, %s535_s11   ;;  %s325_s7 = sshll.u32 %s543_s13, 7 }
  0x23   : > { %s659_s5 = scalar_select %p64_p10, %s535_s11, %s66_s26  }
  0x24   : > { %s324_s6 = sshll.u32 %s144_s4, 3  ;;  %s154_s16 = scalar_lea.hbm %s729_s1, %s325_s7 }
  0x25   : > { %s148_s22 = scalar_lea.vmem [#allocation5], %s324_s6  ;;  %p665_p11 = pnand %p357_p9, %p75_p13 }
  0x26   : > { %s156_s23 = sshll.u32 %s148_s22, 4  ;;  %s145_s18 = scalar_lea.sflag [#allocation6], %s144_s4  ;;  %s157_s23 = int_to_ptr.vmem [resolvable:$true] %s156_s23 }
  0x27   : > { %p437_p2 = pneg %p665_p11  ;;  %s448_s27 = scalar_lea.vmem %s157_s23, 128 }
  0x28   : > { %p449_p12 = scmp.ne.s32.totalorder %s157_s23, %s448_s27  ;;  %s550_s26 = smov [#allocation5]  }
  0x29   : > { %s453_s28 = sshll.u32 %s550_s26, 4  ;;  %s454_s28 = int_to_ptr.vmem [resolvable:$false] %s453_s28 }
  0x2a   : > { %p451_p3 = pnand %p449_p12, %p437_p2  ;;  %s455_s29 = scalar_lea.vmem %s454_s28, 256 }
  0x2b   : > { %p456_p7 = scmp.lt.s32.totalorder %s157_s23, %s454_s28  ;;  %p457_p6 = scmp.lt.s32.totalorder %s455_s29, %s448_s27 }
  0x2c   : > { %p452_p5 = pneg %p451_p3 }
  0x2d   : > { %p458_p4 = por %p457_p6, %p456_p7 }
  0x2f   : > { %p459_p10 = pnand %p458_p4, %p452_p5 }
  0x31   : > { %462 = shalt.err (!%p459_p10)
}
  0x32   : > { %351 = dma.hbm_to_vmem [thread:$0]  (!%p665_p11), %s154_s16, 128, %s157_s23, %s145_s18  }
  0x33   : > { %165 = sbr.rel (%p621_p8) target bundleno = 85 (0x55), region = 28 }
  0x38   : > { %514 = dma.done.wait (%p601_p1), [#allocation3], 32  }
  0x39   : > { %516 = vsyncadd (%p601_p1), [#allocation3], 4294967264  ;;  %s680_s30 = sand.u32 1, %s531_s10   ;;  %p740_p9 = scmp.ne.s32.totalorder %s734_s19, 0 }
  0x3a   : > { %s328_s4 = sshll.u32 %s680_s30, 3  ;;  %s172_s6 = scalar_lea.sflag [#allocation6], %s680_s30 }
  0x3b   : > { %s175_s7 = scalar_lea.vmem [#allocation5], %s328_s4 }
  0x3c   : > { %518 = dma.done.wait (%p740_p9), %s172_s6, 128  }
  0x3d   : > { %520 = vsyncadd (%p740_p9), %s172_s6, 4294967168  ;;  %s195_s21 = scalar_lea.vmem [#allocation7], %s328_s4  ;;  %v330_v0 = vld [vmem:[#allocation2] ss:$0 sm:$0xff]  ;;  %v331_v1 = vld [vmem:[#allocation2 + $0x1] ss:$0 sm:$0xff] }
  0x3e   : > { %s225_s17 = sshll.u32 %s195_s21, 4  ;;  %v198_v2 = vld [vmem:[%s175_s7] sm:$0xff]  ;;  %s333_s8 = sshll.u32 %s539_s12, 7  ;;  %s226_s17 = int_to_ptr.vmem [resolvable:$true] %s225_s17 }
  0x3f   : > { %v203_v3 = vmul.f32 %v330_v0, %v198_v2  ;;  %s223_s22 = scalar_lea.hbm %s730_s2, %s333_s8  ;;  %s211_s23 = scalar_lea.sflag [#allocation4], %s680_s30 }
  0x40   : > { %s463_s19 = scalar_lea.vmem %s226_s17, 128  ;;  %s551_s24 = smov [#allocation7]  }
  0x41   : > { %v208_v4 = vadd.f32 %v331_v1, %v203_v3  ;;  %p464_p1 = scmp.ne.s32.totalorder %s226_s17, %s463_s19  ;;  %s467_s18 = sshll.u32 %s551_s24, 4  ;;  %s468_s18 = int_to_ptr.vmem [resolvable:$false] %s467_s18 }
  0x42   : > { %s469_s27 = scalar_lea.vmem %s468_s18, 256  ;;  %p470_p11 = scmp.lt.s32.totalorder %s226_s17, %s468_s18 }
  0x43   : > { %209 = vst [vmem:[%s195_s21] sm:$0xff] %v208_v4  ;;  %p465_p8 = pnand %p464_p1, %p653_p0  ;;  %p471_p2 = scmp.lt.s32.totalorder %s469_s27, %s463_s19 }
  0x45   : > { %p466_p13 = pneg %p465_p8  ;;  %p472_p12 = por %p471_p2, %p470_p11 }
  0x47   : > { %p473_p3 = pnand %p472_p12, %p466_p13 }
  0x49   : > { %476 = shalt.err (!%p473_p3)
}
  0x4a   : > { %s477_s12 = scalar_lea.hbm %s223_s22, 128  ;;  %s481_s29 = scalar_lea.hbm %s730_s2, 256 }
  0x4b   : > { %p478_p5 = scmp.ne.s32.totalorder %s223_s22, %s477_s12  ;;  %p482_p4 = scmp.lt.s32.totalorder %s223_s22, %s730_s2 }
  0x4c   : > { %p483_p10 = scmp.lt.s32.totalorder %s481_s29, %s477_s12 }
  0x4d   : > { %p479_p7 = pnand %p478_p5, %p653_p0 }
  0x4e   : > { %p484_p9 = por %p483_p10, %p482_p4 }
  0x4f   : > { %p480_p6 = pneg %p479_p7 }
  0x51   : > { %p485_p1 = pnand %p484_p9, %p480_p6 }
  0x53   : > { %488 = shalt.err (!%p485_p1)
}
  0x54   : > { %342 = dma.vmem_to_hbm [thread:$0]  (%p653_p0), %s226_s17, 128, %s223_s22, %s211_s23  }
  0x55 PF: > { %s237_s6 = sand.u32 1, %s527_s9   ;;  %p741_p8 = scmp.ne.s32.totalorder %s735_s20, 0 }
  0x56   : > { %p742_p13 = scmp.ge.s32.totalorder %s547_s14, 2  ;;  %s238_s7 = scalar_lea.sflag [#allocation4], %s237_s6 }
  0x58   : > { %p353_p11 = pnand %p742_p13, %p741_p8 }
  0x5a   : > { %p354_p2 = pneg %p353_p11 }
  0x5c   : > { %522 = dma.done.wait (%p354_p2), %s238_s7, 128  }
  0x5d   : > { %524 = vsyncadd (%p354_p2), %s238_s7, 4294967168  ;;  %s19_s14 = sadd.s32 1, %s547_s14   ;;  %s743_s9 = smov %s531_s10 }
  0x5e   : > { %p16_p12 = scmp.ge.s32.totalorder %s19_s14, 4   ;;  %s744_s10 = smov %s535_s11 }
  0x5f   : > { %s745_s11 = smov %s659_s5  ;;  %s746_s12 = smov %s543_s13 }
  0x60   : > { %s747_s13 = smov %s749_s25  ;;  %18 = sbr.rel (!%p16_p12) target bundleno = 7 (0x7), region = 79 }
  0x65   :  { %243 = vsyncpa [#allocation3], 1 }
  0x66   :  { %245 = vsyncpa [#allocation3 + $0x1], 1 }
  0x67   :  { %246 = vsyncpa [#allocation6], 1 }
  0x68   :  { %248 = vsyncpa [#allocation6 + $0x1], 1 }
  0x69   :  { %249 = vsyncpa [#allocation4], 1 }
  0x6a   :  { %251 = vsyncpa [#allocation4 + $0x1], 1 }

</bundles_post_ra>
